<compile_context>
chip_gen: v6e
topology: v6e:2x2x1
jax: 0.10.0
libtpu: 0.0.40
codegen_flags: <defaults>
</compile_context>

<pallas_src>
import functools

import jax
import jax.numpy as jnp
from jax.experimental import pallas as pl
from jax.experimental.pallas import tpu as pltpu


def _round_up(x, m):
    return (x + m - 1) // m * m


# ---------------------------------------------------------------------------
# Kernel: whole forward pass fused, one batch tile per grid step.
#   refs: x_ref (Bblk, Kin) bf16, w_ref (Krows, Wtot) bf16, b_ref (1, Wtot) f32,
#         out_ref (Bblk, OUTp) f32
#   `layout` maps segment name -> (lo, hi, fan_in); all values multiples of 128.
# ---------------------------------------------------------------------------
def _mlp_kernel(layout, num_layers, attention, x_ref, w_ref, b_ref, out_ref):
    x = x_ref[...]                                     # (Bblk, Kin) bf16, zero-padded lanes

    def dense(h_bf16, name):
        lo, hi, fan_in = layout[name]                  # static, 128-aligned
        wk = w_ref[:fan_in, lo:hi]                     # zero-cost bf16 view of the slab
        acc = jnp.dot(h_bf16, wk, preferred_element_type=jnp.float32)
        return acc + b_ref[:, lo:hi]                   # (1, w) bias broadcast over rows

    if attention:
        h = jnp.maximum(dense(x, "att1"), 0.0).astype(jnp.bfloat16)   # ReLU in att Sequential
        gate = jax.nn.sigmoid(dense(h, "att2"))                       # f32; padded lanes -> 0.5
        # padded lanes of x are exactly 0, so 0.5 * 0 = 0 keeps padding clean.
        x = (gate * x.astype(jnp.float32)).astype(jnp.bfloat16)       # w * x gating

    h = x
    for i in range(num_layers):
        # nn.Dropout(0.2) -> identity at inference time.
        h = jnp.maximum(dense(h, f"l{i}"), 0.0).astype(jnp.bfloat16)  # activation = ReLU

    # Output segment is a full 128-lane multiple (zeros beyond num_output):
    # lane-dense, unmasked store; wrapper slices [:B, :num_output].
    out_ref[...] = dense(h, "out").astype(out_ref.dtype)


# ---------------------------------------------------------------------------
# Pack all Linear weights/biases into one bf16 weight slab + one f32 bias row.
# Every segment is 128-lane aligned; slab rows cover the largest padded fan-in.
# ---------------------------------------------------------------------------
def pack_params(params, *, input_size, hidden_size, num_layers, num_output, attention):
    Kin = _round_up(max(input_size, 1), 128)       # padded input width (x lanes)
    Hp = _round_up(max(hidden_size, 1), 128)       # padded hidden width
    OUTp = _round_up(max(num_output, 1), 128)      # padded output width
    Krows = max(Kin, Hp)                           # slab contraction (row) dim

    layout = {}
    cur = 0

    def add(name, width, fan_in):
        nonlocal cur
        layout[name] = (cur, cur + width, fan_in)
        cur += width

    if attention:
        add("att1", Hp, Kin)                       # x (padded) -> hidden (padded)
        add("att2", Kin, Hp)                       # hidden -> gate over padded input
    for i in range(num_layers):
        add(f"l{i}", Hp, Kin if i == 0 else Hp)
    add("out", OUTp, Hp)
    Wtot = cur

    w_slab = jnp.zeros((Krows, Wtot), jnp.float32)
    b_slab = jnp.zeros((1, Wtot), jnp.float32)

    def place(ws, bs, name, w, b):
        lo, _, _ = layout[name]
        fi, fo = w.shape
        ws = ws.at[:fi, lo:lo + fo].set(w)
        bs = bs.at[:, lo:lo + fo].set(b)
        return ws, bs

    if attention:
        w_slab, b_slab = place(w_slab, b_slab, "att1", params["att_w1"], params["att_b1"])
        w_slab, b_slab = place(w_slab, b_slab, "att2", params["att_w2"], params["att_b2"])
    for i in range(num_layers):
        w_slab, b_slab = place(w_slab, b_slab, f"l{i}", params[f"w{i}"], params[f"b{i}"])
    w_slab, b_slab = place(w_slab, b_slab, "out", params["w_out"], params["b_out"])

    return w_slab.astype(jnp.bfloat16), b_slab, layout, Kin


# ---------------------------------------------------------------------------
# Wrapper: pad x (bf16), launch a batch-parallel grid with resident weight slabs.
# ---------------------------------------------------------------------------
def mlp_model_forward(x, w_slab, b_slab, layout, kin, *, num_layers, attention,
                      num_output, input_size):
    B = x.shape[0]
    Krows, Wtot = w_slab.shape
    out_lo, out_hi, _ = layout["out"]
    out_w = out_hi - out_lo

    # Batch tiling: 256 fills the 256-deep MXU on v6e/v7x (and keeps >=2 grid
    # steps so "parallel" can split across v7x's two TensorCores); 128 is
    # already M-saturating on v5e; tiny batches just round up to the sublane.
    if B >= 512:
        Bblk = 256
    elif B >= 128:
        Bblk = 128
    else:
        Bblk = _round_up(max(B, 1), 8)
    Bpad = _round_up(B, Bblk)

    # x streamed in bf16 (halves DMA + double-buffer VMEM); padded lanes are 0.
    xp = jnp.zeros((Bpad, kin), jnp.bfloat16).at[:B, :input_size].set(
        x.astype(jnp.bfloat16))

    kernel = functools.partial(_mlp_kernel, layout, num_layers, attention)

    # VMEM budget: slab (x2 for safety), double-buffered x/out tiles, headroom.
    slab_bytes = int(w_slab.size) * 2 + int(b_slab.size) * 4
    stream_bytes = 2 * Bblk * kin * 2 + 2 * Bblk * out_w * 4
    need = 2 * slab_bytes + stream_bytes + (2 << 20)
    vmem_limit = int(min(64 * 1024 * 1024, max(need, 8 * 1024 * 1024)))

    def build(single_buffer_slabs):
        extra = {"pipeline_mode": pl.Buffered(1)} if single_buffer_slabs else {}
        return pl.pallas_call(
            kernel,
            out_shape=jax.ShapeDtypeStruct((Bpad, out_w), jnp.float32),
            grid_spec=pltpu.PrefetchScalarGridSpec(
                num_scalar_prefetch=0,
                grid=(Bpad // Bblk,),
                in_specs=[
                    pl.BlockSpec((Bblk, kin), lambda i: (i, 0)),            # streamed batch tile
                    pl.BlockSpec((Krows, Wtot), lambda i: (0, 0), **extra),  # resident weights
                    pl.BlockSpec((1, Wtot), lambda i: (0, 0), **extra),      # resident biases
                ],
                out_specs=pl.BlockSpec((Bblk, out_w), lambda i: (i, 0)),
            ),
            compiler_params=pltpu.CompilerParams(
                dimension_semantics=("parallel",),      # splits batch across TCs on v7x
                vmem_limit_bytes=vmem_limit),
        )

    try:
        yp = build(True)(xp, w_slab, b_slab)
    except Exception:
        # pipeline_mode=Buffered(1) not supported by this JAX/libtpu build:
        # fall back to default double-buffered (still correct, slightly more VMEM).
        yp = build(False)(xp, w_slab, b_slab)

    return yp[:B, :num_output]


# ---------------------------------------------------------------------------
# Deterministic parameter init (PyTorch-style uniform(-1/sqrt(fan_in), +)).
# Weights are stored PRE-TRANSPOSED as (in_features, out_features).
# ---------------------------------------------------------------------------
def init_params(key, input_size, hidden_size, num_layers, num_output, attention):
    params = {}

    def linear(key, fan_in, fan_out):
        kw, kb = jax.random.split(key)
        bound = 1.0 / jnp.sqrt(fan_in)
        w = jax.random.uniform(kw, (fan_in, fan_out), jnp.float32, -bound, bound)
        b = jax.random.uniform(kb, (1, fan_out), jnp.float32, -bound, bound)
        return w, b

    keys = jax.random.split(key, num_layers + 3)
    k = 0
    for i in range(num_layers):
        fan_in = input_size if i == 0 else hidden_size
        params[f"w{i}"], params[f"b{i}"] = linear(keys[k], fan_in, hidden_size)
        k += 1
    params["w_out"], params["b_out"] = linear(keys[k], hidden_size, num_output)
    k += 1
    if attention:
        params["att_w1"], params["att_b1"] = linear(keys[k], input_size, hidden_size)
        k += 1
        params["att_w2"], params["att_b2"] = linear(keys[k], hidden_size, input_size)
    return params


# Pure-JAX reference mirroring the kernel's bf16-weight/activation, f32-accumulate math.
def reference_forward(x, params, *, num_layers, attention):
    def lin(h_bf16, w, b):
        return jnp.dot(h_bf16, w.astype(jnp.bfloat16),
                       preferred_element_type=jnp.float32) + b

    xb = x.astype(jnp.bfloat16)
    if attention:
        h = jnp.maximum(lin(xb, params["att_w1"], params["att_b1"]), 0.0).astype(jnp.bfloat16)
        g = jax.nn.sigmoid(lin(h, params["att_w2"], params["att_b2"]))
        xb = (g * xb.astype(jnp.float32)).astype(jnp.bfloat16)
    h = xb
    for i in range(num_layers):
        h = jnp.maximum(lin(h, params[f"w{i}"], params[f"b{i}"]), 0.0).astype(jnp.bfloat16)
    return lin(h, params["w_out"], params["b_out"])


if __name__ == "__main__":
    # Small shapes consistent with the module's forward.
    B, INPUT, HIDDEN, LAYERS, OUT = 2, 16, 32, 2, 8
    ATTENTION = True

    key = jax.random.PRNGKey(0)
    kx, kp = jax.random.split(key)
    x = jax.random.normal(kx, (B, INPUT), jnp.float32)
    params = init_params(kp, INPUT, HIDDEN, LAYERS, OUT, ATTENTION)

    w_slab, b_slab, layout, kin = pack_params(
        params, input_size=INPUT, hidden_size=HIDDEN, num_layers=LAYERS,
        num_output=OUT, attention=ATTENTION)

    y = mlp_model_forward(x, w_slab, b_slab, layout, kin, num_layers=LAYERS,
                          attention=ATTENTION, num_output=OUT, input_size=INPUT)
    y = jax.block_until_ready(y)

    y_ref = reference_forward(x, params, num_layers=LAYERS, attention=ATTENTION)
    assert y.shape == (B, OUT)
    assert jnp.allclose(y, y_ref, atol=1e-2, rtol=1e-2), "mismatch vs reference"

    print("KERNEL_OK")
</pallas_src>

<mosaic_0001>
module attributes {stable_mosaic.version = 11 : i64} {
  func.func @_mlp_kernel(%arg0: i32, %arg1: memref<8x128xbf16, #tpu.memory_space<vmem>>, %arg2: memref<128x640xbf16, #tpu.memory_space<vmem>>, %arg3: memref<1x640xf32, #tpu.memory_space<vmem>>, %arg4: memref<8x128xf32, #tpu.memory_space<vmem>>) attributes {dimension_semantics = [#tpu.dimension_semantics<parallel>], iteration_bounds = array<i64: 1>, scalar_prefetch = 0 : i64, scratch_operands = 0 : i64, tpu.core_type = #tpu.core_type<tc>, window_params = [{transform_indices = @transform_0, window_bounds = array<i64: 8, 128>}, {pipeline_mode = #tpu.pipeline_mode<synchronous>, transform_indices = @transform_1, window_bounds = array<i64: 128, 640>}, {pipeline_mode = #tpu.pipeline_mode<synchronous>, transform_indices = @transform_2, window_bounds = array<i64: 1, 640>}, {transform_indices = @transform_3, window_bounds = array<i64: 8, 128>}]} {
    %c0 = arith.constant 0 : index
    %c0_0 = arith.constant 0 : index
    %0 = vector.load %arg1[%c0, %c0_0] : memref<8x128xbf16, #tpu.memory_space<vmem>>, vector<8x128xbf16>
    %c0_1 = arith.constant 0 : index
    %c0_2 = arith.constant 0 : index
    %1 = vector.load %arg2[%c0_1, %c0_2] : memref<128x640xbf16, #tpu.memory_space<vmem>>, vector<128x128xbf16>
    %cst = arith.constant dense<0.000000e+00> : vector<8x128xf32>
    %2 = tpu.matmul %0, %1, %cst {dimension_numbers = #tpu.dot_dimension_numbers<[1], [0], [0], [1], [0, 0, 1, 1], [], []>} : vector<8x128xbf16>, vector<128x128xbf16>, vector<8x128xf32> -> vector<8x128xf32>
    %c0_3 = arith.constant 0 : index
    %c0_4 = arith.constant 0 : index
    %3 = vector.load %arg3[%c0_3, %c0_4] : memref<1x640xf32, #tpu.memory_space<vmem>>, vector<1x128xf32>
    %4 = vector.broadcast %3 : vector<1x128xf32> to vector<8x128xf32>
    %5 = arith.addf %2, %4 : vector<8x128xf32>
    %cst_5 = arith.constant 0.000000e+00 : f32
    %6 = vector.broadcast %cst_5 : f32 to vector<8x128xf32>
    %7 = arith.maximumf %5, %6 : vector<8x128xf32>
    %8 = arith.truncf %7 : vector<8x128xf32> to vector<8x128xbf16>
    %c0_6 = arith.constant 0 : index
    %c128 = arith.constant 128 : index
    %9 = vector.load %arg2[%c0_6, %c128] : memref<128x640xbf16, #tpu.memory_space<vmem>>, vector<128x128xbf16>
    %cst_7 = arith.constant dense<0.000000e+00> : vector<8x128xf32>
    %10 = tpu.matmul %8, %9, %cst_7 {dimension_numbers = #tpu.dot_dimension_numbers<[1], [0], [0], [1], [0, 0, 1, 1], [], []>} : vector<8x128xbf16>, vector<128x128xbf16>, vector<8x128xf32> -> vector<8x128xf32>
    %c0_8 = arith.constant 0 : index
    %c128_9 = arith.constant 128 : index
    %11 = vector.load %arg3[%c0_8, %c128_9] : memref<1x640xf32, #tpu.memory_space<vmem>>, vector<1x128xf32>
    %12 = vector.broadcast %11 : vector<1x128xf32> to vector<8x128xf32>
    %13 = arith.addf %10, %12 : vector<8x128xf32>
    %14 = arith.negf %13 : vector<8x128xf32>
    %15 = math.exp %14 : vector<8x128xf32>
    %cst_10 = arith.constant 1.000000e+00 : f32
    %16 = vector.broadcast %cst_10 : f32 to vector<8x128xf32>
    %17 = arith.addf %16, %15 : vector<8x128xf32>
    %18 = arith.divf %16, %17 : vector<8x128xf32>
    %19 = arith.extf %0 : vector<8x128xbf16> to vector<8x128xf32>
    %20 = arith.mulf %18, %19 : vector<8x128xf32>
    %21 = arith.truncf %20 : vector<8x128xf32> to vector<8x128xbf16>
    %c0_11 = arith.constant 0 : index
    %c256 = arith.constant 256 : index
    %22 = vector.load %arg2[%c0_11, %c256] : memref<128x640xbf16, #tpu.memory_space<vmem>>, vector<128x128xbf16>
    %cst_12 = arith.constant dense<0.000000e+00> : vector<8x128xf32>
    %23 = tpu.matmul %21, %22, %cst_12 {dimension_numbers = #tpu.dot_dimension_numbers<[1], [0], [0], [1], [0, 0, 1, 1], [], []>} : vector<8x128xbf16>, vector<128x128xbf16>, vector<8x128xf32> -> vector<8x128xf32>
    %c0_13 = arith.constant 0 : index
    %c256_14 = arith.constant 256 : index
    %24 = vector.load %arg3[%c0_13, %c256_14] : memref<1x640xf32, #tpu.memory_space<vmem>>, vector<1x128xf32>
    %25 = vector.broadcast %24 : vector<1x128xf32> to vector<8x128xf32>
    %26 = arith.addf %23, %25 : vector<8x128xf32>
    %cst_15 = arith.constant 0.000000e+00 : f32
    %27 = vector.broadcast %cst_15 : f32 to vector<8x128xf32>
    %28 = arith.maximumf %26, %27 : vector<8x128xf32>
    %29 = arith.truncf %28 : vector<8x128xf32> to vector<8x128xbf16>
    %c0_16 = arith.constant 0 : index
    %c384 = arith.constant 384 : index
    %30 = vector.load %arg2[%c0_16, %c384] : memref<128x640xbf16, #tpu.memory_space<vmem>>, vector<128x128xbf16>
    %cst_17 = arith.constant dense<0.000000e+00> : vector<8x128xf32>
    %31 = tpu.matmul %29, %30, %cst_17 {dimension_numbers = #tpu.dot_dimension_numbers<[1], [0], [0], [1], [0, 0, 1, 1], [], []>} : vector<8x128xbf16>, vector<128x128xbf16>, vector<8x128xf32> -> vector<8x128xf32>
    %c0_18 = arith.constant 0 : index
    %c384_19 = arith.constant 384 : index
    %32 = vector.load %arg3[%c0_18, %c384_19] : memref<1x640xf32, #tpu.memory_space<vmem>>, vector<1x128xf32>
    %33 = vector.broadcast %32 : vector<1x128xf32> to vector<8x128xf32>
    %34 = arith.addf %31, %33 : vector<8x128xf32>
    %cst_20 = arith.constant 0.000000e+00 : f32
    %35 = vector.broadcast %cst_20 : f32 to vector<8x128xf32>
    %36 = arith.maximumf %34, %35 : vector<8x128xf32>
    %37 = arith.truncf %36 : vector<8x128xf32> to vector<8x128xbf16>
    %c0_21 = arith.constant 0 : index
    %c512 = arith.constant 512 : index
    %38 = vector.load %arg2[%c0_21, %c512] : memref<128x640xbf16, #tpu.memory_space<vmem>>, vector<128x128xbf16>
    %cst_22 = arith.constant dense<0.000000e+00> : vector<8x128xf32>
    %39 = tpu.matmul %37, %38, %cst_22 {dimension_numbers = #tpu.dot_dimension_numbers<[1], [0], [0], [1], [0, 0, 1, 1], [], []>} : vector<8x128xbf16>, vector<128x128xbf16>, vector<8x128xf32> -> vector<8x128xf32>
    %c0_23 = arith.constant 0 : index
    %c512_24 = arith.constant 512 : index
    %40 = vector.load %arg3[%c0_23, %c512_24] : memref<1x640xf32, #tpu.memory_space<vmem>>, vector<1x128xf32>
    %41 = vector.broadcast %40 : vector<1x128xf32> to vector<8x128xf32>
    %42 = arith.addf %39, %41 : vector<8x128xf32>
    %c0_25 = arith.constant 0 : index
    %c0_26 = arith.constant 0 : index
    %43 = vector.load %arg4[%c0_25, %c0_26] : memref<8x128xf32, #tpu.memory_space<vmem>>, vector<8x128xf32>
    tpu.vector_store %arg4[%c0_25, %c0_26], %42 {strides = array<i32>} : memref<8x128xf32, #tpu.memory_space<vmem>>, vector<8x128xf32>,
    return
  }
  func.func @transform_0(%arg0: i32) -> (i32, i32) {
    %c0_i32 = arith.constant 0 : i32
    %c0_i32_0 = arith.constant 0 : i32
    return %arg0, %c0_i32 : i32, i32
  }
  func.func @transform_1(%arg0: i32) -> (i32, i32) {
    %c0_i32 = arith.constant 0 : i32
    %c0_i32_0 = arith.constant 0 : i32
    %c0_i32_1 = arith.constant 0 : i32
    return %c0_i32, %c0_i32_0 : i32, i32
  }
  func.func @transform_2(%arg0: i32) -> (i32, i32) {
    %c0_i32 = arith.constant 0 : i32
    %c0_i32_0 = arith.constant 0 : i32
    %c0_i32_1 = arith.constant 0 : i32
    return %c0_i32, %c0_i32_0 : i32, i32
  }
  func.func @transform_3(%arg0: i32) -> (i32, i32) {
    %c0_i32 = arith.constant 0 : i32
    %c0_i32_0 = arith.constant 0 : i32
    return %arg0, %c0_i32 : i32, i32
  }
}

module attributes {stable_mosaic.version = 11 : i64} {
  func.func @_mlp_kernel(%arg0: i32, %arg1: memref<8x128xbf16, #tpu.memory_space<vmem>>, %arg2: memref<128x640xbf16, #tpu.memory_space<vmem>>, %arg3: memref<1x640xf32, #tpu.memory_space<vmem>>, %arg4: memref<8x128xf32, #tpu.memory_space<vmem>>) attributes {dimension_semantics = [#tpu.dimension_semantics<parallel>], iteration_bounds = array<i64: 1>, scalar_prefetch = 0 : i64, scratch_operands = 0 : i64, tpu.core_type = #tpu.core_type<tc>, window_params = [{transform_indices = @transform_0, window_bounds = array<i64: 8, 128>}, {pipeline_mode = #tpu.pipeline_mode<synchronous>, transform_indices = @transform_1, window_bounds = array<i64: 128, 640>}, {pipeline_mode = #tpu.pipeline_mode<synchronous>, transform_indices = @transform_2, window_bounds = array<i64: 1, 640>}, {transform_indices = @transform_3, window_bounds = array<i64: 8, 128>}]} {
    %c0 = arith.constant 0 : index
    %c0_0 = arith.constant 0 : index
    %0 = vector.load %arg1[%c0, %c0_0] : memref<8x128xbf16, #tpu.memory_space<vmem>>, vector<8x128xbf16>
    %c0_1 = arith.constant 0 : index
    %c0_2 = arith.constant 0 : index
    %1 = vector.load %arg2[%c0_1, %c0_2] : memref<128x640xbf16, #tpu.memory_space<vmem>>, vector<128x128xbf16>
    %cst = arith.constant dense<0.000000e+00> : vector<8x128xf32>
    %2 = tpu.matmul %0, %1, %cst {dimension_numbers = #tpu.dot_dimension_numbers<[1], [0], [0], [1], [0, 0, 1, 1], [], []>} : vector<8x128xbf16>, vector<128x128xbf16>, vector<8x128xf32> -> vector<8x128xf32>
    %c0_3 = arith.constant 0 : index
    %c0_4 = arith.constant 0 : index
    %3 = vector.load %arg3[%c0_3, %c0_4] : memref<1x640xf32, #tpu.memory_space<vmem>>, vector<1x128xf32>
    %4 = vector.broadcast %3 : vector<1x128xf32> to vector<8x128xf32>
    %5 = arith.addf %2, %4 : vector<8x128xf32>
    %cst_5 = arith.constant 0.000000e+00 : f32
    %6 = vector.broadcast %cst_5 : f32 to vector<8x128xf32>
    %7 = arith.maximumf %5, %6 : vector<8x128xf32>
    %8 = arith.truncf %7 : vector<8x128xf32> to vector<8x128xbf16>
    %c0_6 = arith.constant 0 : index
    %c128 = arith.constant 128 : index
    %9 = vector.load %arg2[%c0_6, %c128] : memref<128x640xbf16, #tpu.memory_space<vmem>>, vector<128x128xbf16>
    %cst_7 = arith.constant dense<0.000000e+00> : vector<8x128xf32>
    %10 = tpu.matmul %8, %9, %cst_7 {dimension_numbers = #tpu.dot_dimension_numbers<[1], [0], [0], [1], [0, 0, 1, 1], [], []>} : vector<8x128xbf16>, vector<128x128xbf16>, vector<8x128xf32> -> vector<8x128xf32>
    %c0_8 = arith.constant 0 : index
    %c128_9 = arith.constant 128 : index
    %11 = vector.load %arg3[%c0_8, %c128_9] : memref<1x640xf32, #tpu.memory_space<vmem>>, vector<1x128xf32>
    %12 = vector.broadcast %11 : vector<1x128xf32> to vector<8x128xf32>
    %13 = arith.addf %10, %12 : vector<8x128xf32>
    %14 = arith.negf %13 : vector<8x128xf32>
    %15 = math.exp %14 : vector<8x128xf32>
    %cst_10 = arith.constant 1.000000e+00 : f32
    %16 = vector.broadcast %cst_10 : f32 to vector<8x128xf32>
    %17 = arith.addf %16, %15 : vector<8x128xf32>
    %18 = arith.divf %16, %17 : vector<8x128xf32>
    %19 = arith.extf %0 : vector<8x128xbf16> to vector<8x128xf32>
    %20 = arith.mulf %18, %19 : vector<8x128xf32>
    %21 = arith.truncf %20 : vector<8x128xf32> to vector<8x128xbf16>
    %c0_11 = arith.constant 0 : index
    %c256 = arith.constant 256 : index
    %22 = vector.load %arg2[%c0_11, %c256] : memref<128x640xbf16, #tpu.memory_space<vmem>>, vector<128x128xbf16>
    %cst_12 = arith.constant dense<0.000000e+00> : vector<8x128xf32>
    %23 = tpu.matmul %21, %22, %cst_12 {dimension_numbers = #tpu.dot_dimension_numbers<[1], [0], [0], [1], [0, 0, 1, 1], [], []>} : vector<8x128xbf16>, vector<128x128xbf16>, vector<8x128xf32> -> vector<8x128xf32>
    %c0_13 = arith.constant 0 : index
    %c256_14 = arith.constant 256 : index
    %24 = vector.load %arg3[%c0_13, %c256_14] : memref<1x640xf32, #tpu.memory_space<vmem>>, vector<1x128xf32>
    %25 = vector.broadcast %24 : vector<1x128xf32> to vector<8x128xf32>
    %26 = arith.addf %23, %25 : vector<8x128xf32>
    %cst_15 = arith.constant 0.000000e+00 : f32
    %27 = vector.broadcast %cst_15 : f32 to vector<8x128xf32>
    %28 = arith.maximumf %26, %27 : vector<8x128xf32>
    %29 = arith.truncf %28 : vector<8x128xf32> to vector<8x128xbf16>
    %c0_16 = arith.constant 0 : index
    %c384 = arith.constant 384 : index
    %30 = vector.load %arg2[%c0_16, %c384] : memref<128x640xbf16, #tpu.memory_space<vmem>>, vector<128x128xbf16>
    %cst_17 = arith.constant dense<0.000000e+00> : vector<8x128xf32>
    %31 = tpu.matmul %29, %30, %cst_17 {dimension_numbers = #tpu.dot_dimension_numbers<[1], [0], [0], [1], [0, 0, 1, 1], [], []>} : vector<8x128xbf16>, vector<128x128xbf16>, vector<8x128xf32> -> vector<8x128xf32>
    %c0_18 = arith.constant 0 : index
    %c384_19 = arith.constant 384 : index
    %32 = vector.load %arg3[%c0_18, %c384_19] : memref<1x640xf32, #tpu.memory_space<vmem>>, vector<1x128xf32>
    %33 = vector.broadcast %32 : vector<1x128xf32> to vector<8x128xf32>
    %34 = arith.addf %31, %33 : vector<8x128xf32>
    %cst_20 = arith.constant 0.000000e+00 : f32
    %35 = vector.broadcast %cst_20 : f32 to vector<8x128xf32>
    %36 = arith.maximumf %34, %35 : vector<8x128xf32>
    %37 = arith.truncf %36 : vector<8x128xf32> to vector<8x128xbf16>
    %c0_21 = arith.constant 0 : index
    %c512 = arith.constant 512 : index
    %38 = vector.load %arg2[%c0_21, %c512] : memref<128x640xbf16, #tpu.memory_space<vmem>>, vector<128x128xbf16>
    %cst_22 = arith.constant dense<0.000000e+00> : vector<8x128xf32>
    %39 = tpu.matmul %37, %38, %cst_22 {dimension_numbers = #tpu.dot_dimension_numbers<[1], [0], [0], [1], [0, 0, 1, 1], [], []>} : vector<8x128xbf16>, vector<128x128xbf16>, vector<8x128xf32> -> vector<8x128xf32>
    %c0_23 = arith.constant 0 : index
    %c512_24 = arith.constant 512 : index
    %40 = vector.load %arg3[%c0_23, %c512_24] : memref<1x640xf32, #tpu.memory_space<vmem>>, vector<1x128xf32>
    %41 = vector.broadcast %40 : vector<1x128xf32> to vector<8x128xf32>
    %42 = arith.addf %39, %41 : vector<8x128xf32>
    %c0_25 = arith.constant 0 : index
    %c0_26 = arith.constant 0 : index
    %43 = vector.load %arg4[%c0_25, %c0_26] : memref<8x128xf32, #tpu.memory_space<vmem>>, vector<8x128xf32>
    tpu.vector_store %arg4[%c0_25, %c0_26], %42 {strides = array<i32>} : memref<8x128xf32, #tpu.memory_space<vmem>>, vector<8x128xf32>,
    return
  }
  func.func @transform_0(%arg0: i32) -> (i32, i32) {
    %c0_i32 = arith.constant 0 : i32
    %c0_i32_0 = arith.constant 0 : i32
    return %arg0, %c0_i32 : i32, i32
  }
  func.func @transform_1(%arg0: i32) -> (i32, i32) {
    %c0_i32 = arith.constant 0 : i32
    %c0_i32_0 = arith.constant 0 : i32
    %c0_i32_1 = arith.constant 0 : i32
    return %c0_i32, %c0_i32_0 : i32, i32
  }
  func.func @transform_2(%arg0: i32) -> (i32, i32) {
    %c0_i32 = arith.constant 0 : i32
    %c0_i32_0 = arith.constant 0 : i32
    %c0_i32_1 = arith.constant 0 : i32
    return %c0_i32, %c0_i32_0 : i32, i32
  }
  func.func @transform_3(%arg0: i32) -> (i32, i32) {
    %c0_i32 = arith.constant 0 : i32
    %c0_i32_0 = arith.constant 0 : i32
    return %arg0, %c0_i32 : i32, i32
  }
}

</mosaic_0001>

<bundles_post_ra>
// kernel: tpu_custom_call.1
= control target key start
LH: loop header
LB: loop body
LE: loop exit
PB: predicated region body
PF: predicated region fallthrough
CT: control target
= control target key end

     0   :  { %8 = vsyncpa [#allocation3], 0  ;;  %s1064_s0 = inlined_call_operand.hbm [shape: bf16[8,128], index: 0, kind: input, shape index: {}]   ;;  %s1065_s1 = inlined_call_operand.hbm [shape: bf16[128,640], index: 1, kind: input, shape index: {}]   ;;  %s1066_s2 = inlined_call_operand.hbm [shape: f32[1,640], index: 2, kind: input, shape index: {}]   ;;  %s1067_s3 = inlined_call_operand.hbm [shape: f32[8,128], index: 3, kind: output, shape index: {}]  }
   0x1   :  { %9 = vsyncpa [#allocation6], 0 }
   0x2   :  { %10 = vsyncpa [#allocation4], 0  ;;  %s970_s12 = smov [#allocation5]  }
   0x3   :  { %s26_s13 = sshll.u32 %s970_s12, 4  ;;  %s27_s13 = int_to_ptr.vmem [resolvable:$true] %s26_s13 }
   0x4   :  { %s892_s14 = scalar_lea.vmem %s27_s13, 5120  ;;  %p897_p1 = scmp.lt.s32.totalorder %s27_s13, %s27_s13 }
   0x5   :  { %p893_p0 = scmp.ne.s32.totalorder %s27_s13, %s892_s14  ;;  %p898_p2 = scmp.lt.s32.totalorder %s892_s14, %s892_s14 }
   0x7   :  { %p899_p3 = por %p898_p2, %p897_p1 }
   0x9   :  { %p900_p4 = pnand %p899_p3, %p893_p0 }
   0xb   :  { %903 = shalt.err (!%p900_p4)
}
   0xc   :  { %s971_s15 = smov 320   ;;  %s972_s16 = smov 20  }
   0xd   :  { %32 = dma.hbm_to_vmem [thread:$0]  %s1065_s1, 5120, %s27_s13, [#allocation6], %s971_s15, %s971_s15, %s972_s16  }
   0xe   :  { %s973_s19 = smov [#allocation2]   ;;  %s974_s21 = smov [#allocation7]  }
   0xf   :  { %s17_s20 = sshll.u32 %s973_s19, 4  ;;  %s39_s22 = sshll.u32 %s974_s21, 4  ;;  %s18_s20 = int_to_ptr.vmem [resolvable:$true] %s17_s20  ;;  %s40_s22 = int_to_ptr.vmem [resolvable:$true] %s39_s22 }
  0x10   :  { %s912_s23 = scalar_lea.vmem %s18_s20, 64  ;;  %p917_p6 = scmp.lt.s32.totalorder %s18_s20, %s18_s20 }
  0x11   :  { %p913_p5 = scmp.ne.s32.totalorder %s18_s20, %s912_s23  ;;  %p918_p7 = scmp.lt.s32.totalorder %s912_s23, %s912_s23 }
  0x13   :  { %p919_p8 = por %p918_p7, %p917_p6 }
  0x15   :  { %p920_p9 = pnand %p919_p8, %p913_p5 }
  0x17   :  { %923 = shalt.err (!%p920_p9)
}
  0x18   :  { %20 = dma.hbm_to_vmem [thread:$0]  %s1064_s0, 64, %s18_s20, [#allocation3]  }
  0x19   :  { %s932_s26 = scalar_lea.vmem %s40_s22, 80  ;;  %s936_s1 = scalar_lea.vmem %s40_s22, 96 }
  0x1a   :  { %p933_p10 = scmp.ne.s32.totalorder %s40_s22, %s932_s26  ;;  %p937_p11 = scmp.lt.s32.totalorder %s40_s22, %s40_s22 }
  0x1b   :  { %p938_p12 = scmp.lt.s32.totalorder %s936_s1, %s932_s26 }
  0x1d   :  { %p939_p13 = por %p938_p12, %p937_p11 }
  0x1f   :  { %p940_p0 = pnand %p939_p13, %p933_p10 }
  0x21   :  { %943 = shalt.err (!%p940_p0)
}
  0x22   :  { %42 = dma.hbm_to_vmem [thread:$0]  %s1066_s2, 80, %s40_s22, [#allocation6]  }
  0x23   :  { %964 = dma.done.wait [#allocation3], 64  }
  0x24   :  { %965 = vsyncadd [#allocation3], 4294967232 }
  0x25   :  { %966 = dma.done.wait [#allocation6], 5200  }
  0x26   :  { %967 = vsyncadd [#allocation6], 4294962096  ;;  %v975_v0 = vmov 0.0   ;;  %vm976_vm0 = vmmov 0   ;;  %v840_v1 = vld [vmem:[#allocation5 + $0x118] ss:$20 sps:$4 sm:$0xff]  }
  0x27   :  { %732 = vmatprep.subr.bf16.mxu0 %v975_v0  ;;  %748 = vmatprep.mubr.msk.bf16.mxu0 %vm976_vm0, %v975_v0  ;;  %v841_v2 = vld [vmem:[#allocation5 + $0xf0] ss:$20 sps:$4 sm:$0xff]   ;;  %v842_v3 = vld [vmem:[#allocation5 + $0xc8] ss:$20 sps:$4 sm:$0xff]   ;;  %v843_v5 = vld [vmem:[#allocation5 + $0xa0] ss:$20 sps:$4 sm:$0xff]  }
  0x28   :  { %752 = vmatprep.subr.bf16.mxu1 %v975_v0  ;;  %768 = vmatprep.mubr.msk.bf16.mxu1 %vm976_vm0, %v975_v0  ;;  %v848_v4 = vld [vmem:[#allocation5 + $0x11c] ss:$20 sps:$4 sm:$0xff]   ;;  %v849_v6 = vld [vmem:[#allocation5 + $0xf4] ss:$20 sps:$4 sm:$0xff]   ;;  %v844_v7 = vld [vmem:[#allocation5 + $0x78] ss:$20 sps:$4 sm:$0xff]  }
  0x29   :  { %733 = vmatpush3.bf16.msra.mxu0 %v840_v1  ;;  %753 = vmatpush3.bf16.msra.mxu1 %v848_v4  ;;  %v850_v8 = vld [vmem:[#allocation5 + $0xcc] ss:$20 sps:$4 sm:$0xff]   ;;  %v845_v9 = vld [vmem:[#allocation5 + $0x50] ss:$20 sps:$4 sm:$0xff]   ;;  %v846_v11 = vld [vmem:[#allocation5 + $0x28] ss:$20 sps:$4 sm:$0xff]  }
  0x2a   :  { %734 = vmatprep.subr.bf16.mxu0 %v975_v0  ;;  %754 = vmatprep.subr.bf16.mxu1 %v975_v0  ;;  %v851_v10 = vld [vmem:[#allocation5 + $0xa4] ss:$20 sps:$4 sm:$0xff]   ;;  %v852_v12 = vld [vmem:[#allocation5 + $0x7c] ss:$20 sps:$4 sm:$0xff]   ;;  %v847_v13 = vld [vmem:[#allocation5] ss:$20 sps:$4 sm:$0xff]  }
  0x2b   :  { %v853_v14 = vld [vmem:[#allocation5 + $0x54] ss:$20 sps:$4 sm:$0xff]   ;;  %v1024_v15 = vld [vmem:[#allocation2] sm:$0xf]  ;;  %v854_v16 = vld [vmem:[#allocation5 + $0x2c] ss:$20 sps:$4 sm:$0xff]  }
  0x2c   :  { %v855_v17 = vld [vmem:[#allocation5 + $0x4] ss:$20 sps:$4 sm:$0xff]   ;;  %v641_v18 = vld [vmem:[#allocation7] ss:$0 sm:$0xff]  ;;  %v859_v29 = vld [vmem:[#allocation5 + $0xa8] ss:$20 sps:$4 sm:$0xff]   ;;  %v284_v49 = vunpack.c.l.bf16 %v1024_v15 }
  0x2d   :  { %735 = vmatpush3.bf16.msra.mxu0 %v841_v2  ;;  %755 = vmatpush3.bf16.msra.mxu1 %v849_v6  ;;  %v856_v26 = vld [vmem:[#allocation5 + $0x120] ss:$20 sps:$4 sm:$0xff]   ;;  %v857_v27 = vld [vmem:[#allocation5 + $0xf8] ss:$20 sps:$4 sm:$0xff]   ;;  %v858_v28 = vld [vmem:[#allocation5 + $0xd0] ss:$20 sps:$4 sm:$0xff]  }
  0x2e   :  { %736 = vmatprep.subr.bf16.mxu0 %v975_v0  ;;  %756 = vmatprep.subr.bf16.mxu1 %v975_v0  ;;  %v860_v30 = vld [vmem:[#allocation5 + $0x80] ss:$20 sps:$4 sm:$0xff]   ;;  %v861_v31 = vld [vmem:[#allocation5 + $0x58] ss:$20 sps:$4 sm:$0xff]   ;;  %v862_v32 = vld [vmem:[#allocation5 + $0x30] ss:$20 sps:$4 sm:$0xff]  }
  0x2f   :  { %v863_v33 = vld [vmem:[#allocation5 + $0x8] ss:$20 sps:$4 sm:$0xff]   ;;  %v864_v34 = vld [vmem:[#allocation5 + $0x124] ss:$20 sps:$4 sm:$0xff]   ;;  %v867_v37 = vld [vmem:[#allocation5 + $0xac] ss:$20 sps:$4 sm:$0xff]  }
  0x30   :  { %v865_v35 = vld [vmem:[#allocation5 + $0xfc] ss:$20 sps:$4 sm:$0xff]   ;;  %v866_v36 = vld [vmem:[#allocation5 + $0xd4] ss:$20 sps:$4 sm:$0xff]   ;;  %v868_v38 = vld [vmem:[#allocation5 + $0x84] ss:$20 sps:$4 sm:$0xff]  }
  0x31   :  { %737 = vmatpush3.bf16.msra.mxu0 %v842_v3  ;;  %757 = vmatpush3.bf16.msra.mxu1 %v850_v8  ;;  %v869_v39 = vld [vmem:[#allocation5 + $0x5c] ss:$20 sps:$4 sm:$0xff]   ;;  %v650_v40 = vld [vmem:[#allocation7 + $0x1] ss:$0 sm:$0xff]  ;;  %v870_v53 = vld [vmem:[#allocation5 + $0x34] ss:$20 sps:$4 sm:$0xff]  }
  0x32   :  { %738 = vmatprep.subr.bf16.mxu0 %v975_v0  ;;  %758 = vmatprep.subr.bf16.mxu1 %v975_v0  ;;  %v871_v54 = vld [vmem:[#allocation5 + $0xc] ss:$20 sps:$4 sm:$0xff]   ;;  %v872_v55 = vld [vmem:[#allocation5 + $0x128] ss:$20 sps:$4 sm:$0xff]   ;;  %v875_v58 = vld [vmem:[#allocation5 + $0xb0] ss:$20 sps:$4 sm:$0xff]  }
  0x33   :  { %v873_v56 = vld [vmem:[#allocation5 + $0x100] ss:$20 sps:$4 sm:$0xff]   ;;  %v874_v57 = vld [vmem:[#allocation5 + $0xd8] ss:$20 sps:$4 sm:$0xff]   ;;  %v876_v59 = vld [vmem:[#allocation5 + $0x88] ss:$20 sps:$4 sm:$0xff]  }
  0x34   :  { %v877_v60 = vld [vmem:[#allocation5 + $0x60] ss:$20 sps:$4 sm:$0xff]   ;;  %v878_v6 = vld [vmem:[#allocation5 + $0x38] ss:$20 sps:$4 sm:$0xff]   ;;  %s977_s0 = smov [#allocation8]  }
  0x35   :  { %739 = vmatpush3.bf16.msra.mxu0 %v843_v5  ;;  %759 = vmatpush3.bf16.msra.mxu1 %v851_v10  ;;  %v660_v61 = vld [vmem:[#allocation7 + $0x2] ss:$0 sm:$0xff]  ;;  %v669_v8 = vld [vmem:[#allocation7 + $0x3] ss:$0 sm:$0xff]  ;;  %s631_s2 = sshll.u32 %s977_s0, 4  ;;  %s632_s2 = int_to_ptr.vmem [resolvable:$true] %s631_s2 }
  0x36   :  { %740 = vmatprep.subr.bf16.mxu0 %v975_v0  ;;  %760 = vmatprep.subr.bf16.mxu1 %v975_v0  ;;  %s944_s29 = scalar_lea.vmem %s632_s2, 128  ;;  %p949_p2 = scmp.lt.s32.totalorder %s632_s2, %s632_s2 }
  0x37   :  { %p945_p1 = scmp.ne.s32.totalorder %s632_s2, %s944_s29  ;;  %p950_p3 = scmp.lt.s32.totalorder %s944_s29, %s944_s29 }
  0x39   :  { %741 = vmatpush3.bf16.msra.mxu0 %v844_v7  ;;  %761 = vmatpush3.bf16.msra.mxu1 %v852_v12  ;;  %v879_v7 = vld [vmem:[#allocation5 + $0x10] ss:$20 sps:$4 sm:$0xff]   ;;  %p951_p4 = por %p950_p3, %p949_p2 }
  0x3a   :  { %742 = vmatprep.subr.bf16.mxu0 %v975_v0  ;;  %762 = vmatprep.subr.bf16.mxu1 %v975_v0 }
  0x3b   :  { %p952_p5 = pnand %p951_p4, %p945_p1 }
  0x3d   :  { %743 = vmatpush3.bf16.msra.mxu0 %v845_v9  ;;  %763 = vmatpush3.bf16.msra.mxu1 %v853_v14 }
  0x3e   :  { %744 = vmatprep.subr.bf16.mxu0 %v975_v0  ;;  %764 = vmatprep.subr.bf16.mxu1 %v975_v0 }
  0x41   :  { %745 = vmatpush3.bf16.msra.mxu0 %v846_v11  ;;  %765 = vmatpush3.bf16.msra.mxu1 %v854_v16  ;;  %v678_v16 = vld [vmem:[#allocation7 + $0x4] ss:$0 sm:$0xff] }
  0x42   :  { %746 = vmatprep.subr.bf16.mxu0 %v975_v0  ;;  %766 = vmatprep.subr.bf16.mxu1 %v975_v0 }
  0x45   :  { %747 = vmatpush3.bf16.msra.mxu0 %v847_v13  ;;  %767 = vmatpush3.bf16.msra.mxu1 %v855_v17 }
  0x46   :  { %772 = vmatprep.subr.bf16.mxu0 %v975_v0  ;;  %792 = vmatprep.subr.bf16.mxu1 %v975_v0 }
  0x48   :  { %749 = vmatmul.mubr.bf16.vlgmr.msra.gmra.mxu0 %v1024_v15 }
  0x49   :  { %788 = vmatprep.mubr.msk.bf16.mxu0 %vm976_vm0, %v975_v0  ;;  %773 = vmatpush3.bf16.msra.mxu0 %v856_v26 }
  0x4a   :  { %774 = vmatprep.subr.bf16.mxu0 %v975_v0 }
  0x4d   :  { %775 = vmatpush3.bf16.msra.mxu0 %v857_v27 }
  0x4e   :  { %776 = vmatprep.subr.bf16.mxu0 %v975_v0 }
  0x51   :  { %777 = vmatpush3.bf16.msra.mxu0 %v858_v28 }
  0x52   :  { %778 = vmatprep.subr.bf16.mxu0 %v975_v0 }
  0x55   :  { %779 = vmatpush3.bf16.msra.mxu0 %v859_v29 }
  0x56   :  { %780 = vmatprep.subr.bf16.mxu0 %v975_v0 }
  0x59   :  { %781 = vmatpush3.bf16.msra.mxu0 %v860_v30 }
  0x5a   :  { %782 = vmatprep.subr.bf16.mxu0 %v975_v0 }
  0x5d   :  { %783 = vmatpush3.bf16.msra.mxu0 %v861_v31 }
  0x5e   :  { %784 = vmatprep.subr.bf16.mxu0 %v975_v0 }
  0x61   :  { %785 = vmatpush3.bf16.msra.mxu0 %v862_v32 }
  0x62   :  { %786 = vmatprep.subr.bf16.mxu0 %v975_v0 }
  0x65   :  { %787 = vmatpush3.bf16.msra.mxu0 %v863_v33 }
  0x66   :  { %812 = vmatprep.subr.bf16.mxu0 %v975_v0 }
 0x108   :  { %v159_v19 = vpop.f32.mrf.mxu0 }
 0x109   :  { %v160_v20 = vadd.f32 %v641_v18, %v159_v19 }
 0x10a   :  { %v750_v21 = vpop.f32.mrf.mxu0 }
 0x10b   :  { %v165_v22 = vmax.f32 %v160_v20, 0.0 }
 0x10c   :  { %v162_v23 = vpop.f32.mrf.mxu0 }
 0x10d   :  { %v166_v24 = vpack.c.bf16 %v165_v22, %v165_v22 }
 0x10e   :  { %v751_v25 = vpop.f32.mrf.mxu0 }
 0x10f   :  { %769 = vmatmul.mubr.bf16.vlgmr.msra.gmra.mxu1 %v166_v24 }
 0x110   :  { %808 = vmatprep.mubr.msk.bf16.mxu1 %vm976_vm0, %v975_v0  ;;  %793 = vmatpush3.bf16.msra.mxu1 %v864_v34 }
 0x111   :  { %794 = vmatprep.subr.bf16.mxu1 %v975_v0 }
 0x114   :  { %795 = vmatpush3.bf16.msra.mxu1 %v865_v35 }
 0x115   :  { %796 = vmatprep.subr.bf16.mxu1 %v975_v0 }
 0x118   :  { %797 = vmatpush3.bf16.msra.mxu1 %v866_v36 }
 0x119   :  { %798 = vmatprep.subr.bf16.mxu1 %v975_v0 }
 0x11c   :  { %799 = vmatpush3.bf16.msra.mxu1 %v867_v37 }
 0x11d   :  { %800 = vmatprep.subr.bf16.mxu1 %v975_v0 }
 0x120   :  { %801 = vmatpush3.bf16.msra.mxu1 %v868_v38 }
 0x121   :  { %802 = vmatprep.subr.bf16.mxu1 %v975_v0 }
 0x124   :  { %803 = vmatpush3.bf16.msra.mxu1 %v869_v39 }
 0x125   :  { %804 = vmatprep.subr.bf16.mxu1 %v975_v0 }
 0x128   :  { %805 = vmatpush3.bf16.msra.mxu1 %v870_v53 }
 0x129   :  { %806 = vmatprep.subr.bf16.mxu1 %v975_v0 }
 0x12c   :  { %807 = vmatpush3.bf16.msra.mxu1 %v871_v54 }
 0x1cf   :  { %v272_v41 = vpop.f32.mrf.mxu1 }
 0x1d0   :  { %v273_v42 = vadd.f32 %v650_v40, %v272_v41 }
 0x1d1   :  { %v770_v43 = vpop.f32.mrf.mxu1 }
 0x1d2   :  { %v659_v44 = vmul.f32 -1.442695, %v273_v42 }
 0x1d3   :  { %v275_v45 = vpop.f32.mrf.mxu1 }
 0x1d4   :  { %880 = vpow2.f32 %v659_v44 }
 0x1d5   :  { %v771_v46 = vpop.f32.mrf.mxu1 }
 0x1e1   :  { %v881_v47 = vpop.eup %880 }
 0x1e2   :  { %v281_v48 = vadd.f32 1.0, %v881_v47 }
 0x1e4   :  { %882 = vrcp.f32 %v281_v48 }
 0x1f1   :  { %v883_v50 = vpop.eup %882 }
 0x1f2   :  { %v285_v51 = vmul.f32 %v883_v50, %v284_v49 }
 0x1f4   :  { %v286_v52 = vpack.c.bf16 %v285_v51, %v285_v51 }
 0x1f6   :  { %789 = vmatmul.mubr.bf16.vlgmr.msra.gmra.mxu0 %v286_v52 }
 0x1f7   :  { %828 = vmatprep.mubr.msk.bf16.mxu0 %vm976_vm0, %v975_v0  ;;  %813 = vmatpush3.bf16.msra.mxu0 %v872_v55 }
 0x1f8   :  { %814 = vmatprep.subr.bf16.mxu0 %v975_v0 }
 0x1fb   :  { %815 = vmatpush3.bf16.msra.mxu0 %v873_v56 }
 0x1fc   :  { %816 = vmatprep.subr.bf16.mxu0 %v975_v0 }
 0x1ff   :  { %817 = vmatpush3.bf16.msra.mxu0 %v874_v57 }
 0x200   :  { %818 = vmatprep.subr.bf16.mxu0 %v975_v0 }
 0x203   :  { %819 = vmatpush3.bf16.msra.mxu0 %v875_v58 }
 0x204   :  { %820 = vmatprep.subr.bf16.mxu0 %v975_v0 }
 0x207   :  { %821 = vmatpush3.bf16.msra.mxu0 %v876_v59 }
 0x208   :  { %822 = vmatprep.subr.bf16.mxu0 %v975_v0 }
 0x20b   :  { %823 = vmatpush3.bf16.msra.mxu0 %v877_v60 }
 0x20c   :  { %824 = vmatprep.subr.bf16.mxu0 %v975_v0 }
 0x20f   :  { %825 = vmatpush3.bf16.msra.mxu0 %v878_v6 }
 0x210   :  { %826 = vmatprep.subr.bf16.mxu0 %v975_v0 }
 0x213   :  { %827 = vmatpush3.bf16.msra.mxu0 %v879_v7 }
 0x2b6   :  { %v392_v62 = vpop.f32.mrf.mxu0 }
 0x2b7   :  { %v393_v63 = vadd.f32 %v660_v61, %v392_v62 }
 0x2b8   :  { %v790_v1 = vpop.f32.mrf.mxu0 }
 0x2b9   :  { %v398_v2 = vmax.f32 %v393_v63, 0.0 }
 0x2ba   :  { %v395_v3 = vpop.f32.mrf.mxu0 }
 0x2bb   :  { %v399_v4 = vpack.c.bf16 %v398_v2, %v398_v2 }
 0x2bc   :  { %v791_v5 = vpop.f32.mrf.mxu0 }
 0x2bd   :  { %809 = vmatmul.mubr.bf16.vlgmr.msra.gmra.mxu1 %v399_v4 }
 0x37d   :  { %v505_v9 = vpop.f32.mrf.mxu1 }
 0x37e   :  { %v506_v10 = vadd.f32 %v669_v8, %v505_v9 }
 0x37f   :  { %v810_v11 = vpop.f32.mrf.mxu1 }
 0x380   :  { %v511_v12 = vmax.f32 %v506_v10, 0.0 }
 0x381   :  { %v508_v13 = vpop.f32.mrf.mxu1 }
 0x382   :  { %v512_v14 = vpack.c.bf16 %v511_v12, %v511_v12 }
 0x383   :  { %v811_v15 = vpop.f32.mrf.mxu1 }
 0x384   :  { %829 = vmatmul.mubr.bf16.vlgmr.msra.gmra.mxu0 %v512_v14 }
 0x444   :  { %v618_v17 = vpop.f32.mrf.mxu0 }
 0x445   :  { %v619_v18 = vadd.f32 %v678_v16, %v618_v17 }
 0x446   :  { %v830_v19 = vpop.f32.mrf.mxu0 }
 0x447   :  { %624 = vst [vmem:[#allocation8] sm:$0xff] %v619_v18 }
 0x448   :  { %v621_v0 = vpop.f32.mrf.mxu0 }
 0x449   :  { %955 = shalt.err (!%p952_p5)
}
 0x44a   :  { %634 = dma.vmem_to_hbm [thread:$0]  %s632_s2, 128, %s1067_s3, [#allocation4]   ;;  %v831_v20 = vpop.f32.mrf.mxu0 }
 0x44b   :  { %968 = dma.done.wait [#allocation4], 128  }
 0x44c   :  { %969 = vsyncadd [#allocation4], 4294967168 }
 0x44d   :  { %638 = vsyncpa [#allocation3], 1 }
 0x44e   :  { %639 = vsyncpa [#allocation6], 1 }
 0x44f   :  { %640 = vsyncpa [#allocation4], 1 }

// kernel: tpu_custom_call.1
= control target key start
LH: loop header
LB: loop body
LE: loop exit
PB: predicated region body
PF: predicated region fallthrough
CT: control target
= control target key end

     0   :  { %8 = vsyncpa [#allocation3], 0  ;;  %s1064_s0 = inlined_call_operand.hbm [shape: bf16[8,128], index: 0, kind: input, shape index: {}]   ;;  %s1065_s1 = inlined_call_operand.hbm [shape: bf16[128,640], index: 1, kind: input, shape index: {}]   ;;  %s1066_s2 = inlined_call_operand.hbm [shape: f32[1,640], index: 2, kind: input, shape index: {}]   ;;  %s1067_s3 = inlined_call_operand.hbm [shape: f32[8,128], index: 3, kind: output, shape index: {}]  }
   0x1   :  { %9 = vsyncpa [#allocation6], 0 }
   0x2   :  { %10 = vsyncpa [#allocation4], 0  ;;  %s970_s12 = smov [#allocation5]  }
   0x3   :  { %s26_s13 = sshll.u32 %s970_s12, 4  ;;  %s27_s13 = int_to_ptr.vmem [resolvable:$true] %s26_s13 }
   0x4   :  { %s892_s14 = scalar_lea.vmem %s27_s13, 5120  ;;  %p897_p1 = scmp.lt.s32.totalorder %s27_s13, %s27_s13 }
   0x5   :  { %p893_p0 = scmp.ne.s32.totalorder %s27_s13, %s892_s14  ;;  %p898_p2 = scmp.lt.s32.totalorder %s892_s14, %s892_s14 }
   0x7   :  { %p899_p3 = por %p898_p2, %p897_p1 }
   0x9   :  { %p900_p4 = pnand %p899_p3, %p893_p0 }
   0xb   :  { %903 = shalt.err (!%p900_p4)
}
   0xc   :  { %s971_s15 = smov 320   ;;  %s972_s16 = smov 20  }
   0xd   :  { %32 = dma.hbm_to_vmem [thread:$0]  %s1065_s1, 5120, %s27_s13, [#allocation6], %s971_s15, %s971_s15, %s972_s16  }
   0xe   :  { %s973_s19 = smov [#allocation2]   ;;  %s974_s21 = smov [#allocation7]  }
   0xf   :  { %s17_s20 = sshll.u32 %s973_s19, 4  ;;  %s39_s22 = sshll.u32 %s974_s21, 4  ;;  %s18_s20 = int_to_ptr.vmem [resolvable:$true] %s17_s20  ;;  %s40_s22 = int_to_ptr.vmem [resolvable:$true] %s39_s22 }
  0x10   :  { %s912_s23 = scalar_lea.vmem %s18_s20, 64  ;;  %p917_p6 = scmp.lt.s32.totalorder %s18_s20, %s18_s20 }
  0x11   :  { %p913_p5 = scmp.ne.s32.totalorder %s18_s20, %s912_s23  ;;  %p918_p7 = scmp.lt.s32.totalorder %s912_s23, %s912_s23 }
  0x13   :  { %p919_p8 = por %p918_p7, %p917_p6 }
  0x15   :  { %p920_p9 = pnand %p919_p8, %p913_p5 }
  0x17   :  { %923 = shalt.err (!%p920_p9)
}
  0x18   :  { %20 = dma.hbm_to_vmem [thread:$0]  %s1064_s0, 64, %s18_s20, [#allocation3]  }
  0x19   :  { %s932_s26 = scalar_lea.vmem %s40_s22, 80  ;;  %s936_s1 = scalar_lea.vmem %s40_s22, 96 }
  0x1a   :  { %p933_p10 = scmp.ne.s32.totalorder %s40_s22, %s932_s26  ;;  %p937_p11 = scmp.lt.s32.totalorder %s40_s22, %s40_s22 }
  0x1b   :  { %p938_p12 = scmp.lt.s32.totalorder %s936_s1, %s932_s26 }
  0x1d   :  { %p939_p13 = por %p938_p12, %p937_p11 }
  0x1f   :  { %p940_p0 = pnand %p939_p13, %p933_p10 }
  0x21   :  { %943 = shalt.err (!%p940_p0)
}
  0x22   :  { %42 = dma.hbm_to_vmem [thread:$0]  %s1066_s2, 80, %s40_s22, [#allocation6]  }
  0x23   :  { %964 = dma.done.wait [#allocation3], 64  }
  0x24   :  { %965 = vsyncadd [#allocation3], 4294967232 }
  0x25   :  { %966 = dma.done.wait [#allocation6], 5200  }
  0x26   :  { %967 = vsyncadd [#allocation6], 4294962096  ;;  %v975_v0 = vmov 0.0   ;;  %vm976_vm0 = vmmov 0   ;;  %v840_v1 = vld [vmem:[#allocation5 + $0x118] ss:$20 sps:$4 sm:$0xff]  }
  0x27   :  { %732 = vmatprep.subr.bf16.mxu0 %v975_v0  ;;  %748 = vmatprep.mubr.msk.bf16.mxu0 %vm976_vm0, %v975_v0  ;;  %v841_v2 = vld [vmem:[#allocation5 + $0xf0] ss:$20 sps:$4 sm:$0xff]   ;;  %v842_v3 = vld [vmem:[#allocation5 + $0xc8] ss:$20 sps:$4 sm:$0xff]   ;;  %v843_v5 = vld [vmem:[#allocation5 + $0xa0] ss:$20 sps:$4 sm:$0xff]  }
  0x28   :  { %752 = vmatprep.subr.bf16.mxu1 %v975_v0  ;;  %768 = vmatprep.mubr.msk.bf16.mxu1 %vm976_vm0, %v975_v0  ;;  %v848_v4 = vld [vmem:[#allocation5 + $0x11c] ss:$20 sps:$4 sm:$0xff]   ;;  %v849_v6 = vld [vmem:[#allocation5 + $0xf4] ss:$20 sps:$4 sm:$0xff]   ;;  %v844_v7 = vld [vmem:[#allocation5 + $0x78] ss:$20 sps:$4 sm:$0xff]  }
  0x29   :  { %733 = vmatpush3.bf16.msra.mxu0 %v840_v1  ;;  %753 = vmatpush3.bf16.msra.mxu1 %v848_v4  ;;  %v850_v8 = vld [vmem:[#allocation5 + $0xcc] ss:$20 sps:$4 sm:$0xff]   ;;  %v845_v9 = vld [vmem:[#allocation5 + $0x50] ss:$20 sps:$4 sm:$0xff]   ;;  %v846_v11 = vld [vmem:[#allocation5 + $0x28] ss:$20 sps:$4 sm:$0xff]  }
  0x2a   :  { %734 = vmatprep.subr.bf16.mxu0 %v975_v0  ;;  %754 = vmatprep.subr.bf16.mxu1 %v975_v0  ;;  %v851_v10 = vld [vmem:[#allocation5 + $0xa4] ss:$20 sps:$4 sm:$0xff]   ;;  %v852_v12 = vld [vmem:[#allocation5 + $0x7c] ss:$20 sps:$4 sm:$0xff]   ;;  %v847_v13 = vld [vmem:[#allocation5] ss:$20 sps:$4 sm:$0xff]  }
  0x2b   :  { %v853_v14 = vld [vmem:[#allocation5 + $0x54] ss:$20 sps:$4 sm:$0xff]   ;;  %v1024_v15 = vld [vmem:[#allocation2] sm:$0xf]  ;;  %v854_v16 = vld [vmem:[#allocation5 + $0x2c] ss:$20 sps:$4 sm:$0xff]  }
  0x2c   :  { %v855_v17 = vld [vmem:[#allocation5 + $0x4] ss:$20 sps:$4 sm:$0xff]   ;;  %v641_v18 = vld [vmem:[#allocation7] ss:$0 sm:$0xff]  ;;  %v859_v29 = vld [vmem:[#allocation5 + $0xa8] ss:$20 sps:$4 sm:$0xff]   ;;  %v284_v49 = vunpack.c.l.bf16 %v1024_v15 }
  0x2d   :  { %735 = vmatpush3.bf16.msra.mxu0 %v841_v2  ;;  %755 = vmatpush3.bf16.msra.mxu1 %v849_v6  ;;  %v856_v26 = vld [vmem:[#allocation5 + $0x120] ss:$20 sps:$4 sm:$0xff]   ;;  %v857_v27 = vld [vmem:[#allocation5 + $0xf8] ss:$20 sps:$4 sm:$0xff]   ;;  %v858_v28 = vld [vmem:[#allocation5 + $0xd0] ss:$20 sps:$4 sm:$0xff]  }
  0x2e   :  { %736 = vmatprep.subr.bf16.mxu0 %v975_v0  ;;  %756 = vmatprep.subr.bf16.mxu1 %v975_v0  ;;  %v860_v30 = vld [vmem:[#allocation5 + $0x80] ss:$20 sps:$4 sm:$0xff]   ;;  %v861_v31 = vld [vmem:[#allocation5 + $0x58] ss:$20 sps:$4 sm:$0xff]   ;;  %v862_v32 = vld [vmem:[#allocation5 + $0x30] ss:$20 sps:$4 sm:$0xff]  }
  0x2f   :  { %v863_v33 = vld [vmem:[#allocation5 + $0x8] ss:$20 sps:$4 sm:$0xff]   ;;  %v864_v34 = vld [vmem:[#allocation5 + $0x124] ss:$20 sps:$4 sm:$0xff]   ;;  %v867_v37 = vld [vmem:[#allocation5 + $0xac] ss:$20 sps:$4 sm:$0xff]  }
  0x30   :  { %v865_v35 = vld [vmem:[#allocation5 + $0xfc] ss:$20 sps:$4 sm:$0xff]   ;;  %v866_v36 = vld [vmem:[#allocation5 + $0xd4] ss:$20 sps:$4 sm:$0xff]   ;;  %v868_v38 = vld [vmem:[#allocation5 + $0x84] ss:$20 sps:$4 sm:$0xff]  }
  0x31   :  { %737 = vmatpush3.bf16.msra.mxu0 %v842_v3  ;;  %757 = vmatpush3.bf16.msra.mxu1 %v850_v8  ;;  %v869_v39 = vld [vmem:[#allocation5 + $0x5c] ss:$20 sps:$4 sm:$0xff]   ;;  %v650_v40 = vld [vmem:[#allocation7 + $0x1] ss:$0 sm:$0xff]  ;;  %v870_v53 = vld [vmem:[#allocation5 + $0x34] ss:$20 sps:$4 sm:$0xff]  }
  0x32   :  { %738 = vmatprep.subr.bf16.mxu0 %v975_v0  ;;  %758 = vmatprep.subr.bf16.mxu1 %v975_v0  ;;  %v871_v54 = vld [vmem:[#allocation5 + $0xc] ss:$20 sps:$4 sm:$0xff]   ;;  %v872_v55 = vld [vmem:[#allocation5 + $0x128] ss:$20 sps:$4 sm:$0xff]   ;;  %v875_v58 = vld [vmem:[#allocation5 + $0xb0] ss:$20 sps:$4 sm:$0xff]  }
  0x33   :  { %v873_v56 = vld [vmem:[#allocation5 + $0x100] ss:$20 sps:$4 sm:$0xff]   ;;  %v874_v57 = vld [vmem:[#allocation5 + $0xd8] ss:$20 sps:$4 sm:$0xff]   ;;  %v876_v59 = vld [vmem:[#allocation5 + $0x88] ss:$20 sps:$4 sm:$0xff]  }
  0x34   :  { %v877_v60 = vld [vmem:[#allocation5 + $0x60] ss:$20 sps:$4 sm:$0xff]   ;;  %v878_v6 = vld [vmem:[#allocation5 + $0x38] ss:$20 sps:$4 sm:$0xff]   ;;  %s977_s0 = smov [#allocation8]  }
  0x35   :  { %739 = vmatpush3.bf16.msra.mxu0 %v843_v5  ;;  %759 = vmatpush3.bf16.msra.mxu1 %v851_v10  ;;  %v660_v61 = vld [vmem:[#allocation7 + $0x2] ss:$0 sm:$0xff]  ;;  %v669_v8 = vld [vmem:[#allocation7 + $0x3] ss:$0 sm:$0xff]  ;;  %s631_s2 = sshll.u32 %s977_s0, 4  ;;  %s632_s2 = int_to_ptr.vmem [resolvable:$true] %s631_s2 }
  0x36   :  { %740 = vmatprep.subr.bf16.mxu0 %v975_v0  ;;  %760 = vmatprep.subr.bf16.mxu1 %v975_v0  ;;  %s944_s29 = scalar_lea.vmem %s632_s2, 128  ;;  %p949_p2 = scmp.lt.s32.totalorder %s632_s2, %s632_s2 }
  0x37   :  { %p945_p1 = scmp.ne.s32.totalorder %s632_s2, %s944_s29  ;;  %p950_p3 = scmp.lt.s32.totalorder %s944_s29, %s944_s29 }
  0x39   :  { %741 = vmatpush3.bf16.msra.mxu0 %v844_v7  ;;  %761 = vmatpush3.bf16.msra.mxu1 %v852_v12  ;;  %v879_v7 = vld [vmem:[#allocation5 + $0x10] ss:$20 sps:$4 sm:$0xff]   ;;  %p951_p4 = por %p950_p3, %p949_p2 }
  0x3a   :  { %742 = vmatprep.subr.bf16.mxu0 %v975_v0  ;;  %762 = vmatprep.subr.bf16.mxu1 %v975_v0 }
  0x3b   :  { %p952_p5 = pnand %p951_p4, %p945_p1 }
  0x3d   :  { %743 = vmatpush3.bf16.msra.mxu0 %v845_v9  ;;  %763 = vmatpush3.bf16.msra.mxu1 %v853_v14 }
  0x3e   :  { %744 = vmatprep.subr.bf16.mxu0 %v975_v0  ;;  %764 = vmatprep.subr.bf16.mxu1 %v975_v0 }
  0x41   :  { %745 = vmatpush3.bf16.msra.mxu0 %v846_v11  ;;  %765 = vmatpush3.bf16.msra.mxu1 %v854_v16  ;;  %v678_v16 = vld [vmem:[#allocation7 + $0x4] ss:$0 sm:$0xff] }
  0x42   :  { %746 = vmatprep.subr.bf16.mxu0 %v975_v0  ;;  %766 = vmatprep.subr.bf16.mxu1 %v975_v0 }
  0x45   :  { %747 = vmatpush3.bf16.msra.mxu0 %v847_v13  ;;  %767 = vmatpush3.bf16.msra.mxu1 %v855_v17 }
  0x46   :  { %772 = vmatprep.subr.bf16.mxu0 %v975_v0  ;;  %792 = vmatprep.subr.bf16.mxu1 %v975_v0 }
  0x48   :  { %749 = vmatmul.mubr.bf16.vlgmr.msra.gmra.mxu0 %v1024_v15 }
  0x49   :  { %788 = vmatprep.mubr.msk.bf16.mxu0 %vm976_vm0, %v975_v0  ;;  %773 = vmatpush3.bf16.msra.mxu0 %v856_v26 }
  0x4a   :  { %774 = vmatprep.subr.bf16.mxu0 %v975_v0 }
  0x4d   :  { %775 = vmatpush3.bf16.msra.mxu0 %v857_v27 }
  0x4e   :  { %776 = vmatprep.subr.bf16.mxu0 %v975_v0 }
  0x51   :  { %777 = vmatpush3.bf16.msra.mxu0 %v858_v28 }
  0x52   :  { %778 = vmatprep.subr.bf16.mxu0 %v975_v0 }
  0x55   :  { %779 = vmatpush3.bf16.msra.mxu0 %v859_v29 }
  0x56   :  { %780 = vmatprep.subr.bf16.mxu0 %v975_v0 }
  0x59   :  { %781 = vmatpush3.bf16.msra.mxu0 %v860_v30 }
  0x5a   :  { %782 = vmatprep.subr.bf16.mxu0 %v975_v0 }
  0x5d   :  { %783 = vmatpush3.bf16.msra.mxu0 %v861_v31 }
  0x5e   :  { %784 = vmatprep.subr.bf16.mxu0 %v975_v0 }
  0x61   :  { %785 = vmatpush3.bf16.msra.mxu0 %v862_v32 }
  0x62   :  { %786 = vmatprep.subr.bf16.mxu0 %v975_v0 }
  0x65   :  { %787 = vmatpush3.bf16.msra.mxu0 %v863_v33 }
  0x66   :  { %812 = vmatprep.subr.bf16.mxu0 %v975_v0 }
 0x108   :  { %v159_v19 = vpop.f32.mrf.mxu0 }
 0x109   :  { %v160_v20 = vadd.f32 %v641_v18, %v159_v19 }
 0x10a   :  { %v750_v21 = vpop.f32.mrf.mxu0 }
 0x10b   :  { %v165_v22 = vmax.f32 %v160_v20, 0.0 }
 0x10c   :  { %v162_v23 = vpop.f32.mrf.mxu0 }
 0x10d   :  { %v166_v24 = vpack.c.bf16 %v165_v22, %v165_v22 }
 0x10e   :  { %v751_v25 = vpop.f32.mrf.mxu0 }
 0x10f   :  { %769 = vmatmul.mubr.bf16.vlgmr.msra.gmra.mxu1 %v166_v24 }
 0x110   :  { %808 = vmatprep.mubr.msk.bf16.mxu1 %vm976_vm0, %v975_v0  ;;  %793 = vmatpush3.bf16.msra.mxu1 %v864_v34 }
 0x111   :  { %794 = vmatprep.subr.bf16.mxu1 %v975_v0 }
 0x114   :  { %795 = vmatpush3.bf16.msra.mxu1 %v865_v35 }
 0x115   :  { %796 = vmatprep.subr.bf16.mxu1 %v975_v0 }
 0x118   :  { %797 = vmatpush3.bf16.msra.mxu1 %v866_v36 }
 0x119   :  { %798 = vmatprep.subr.bf16.mxu1 %v975_v0 }
 0x11c   :  { %799 = vmatpush3.bf16.msra.mxu1 %v867_v37 }
 0x11d   :  { %800 = vmatprep.subr.bf16.mxu1 %v975_v0 }
 0x120   :  { %801 = vmatpush3.bf16.msra.mxu1 %v868_v38 }
 0x121   :  { %802 = vmatprep.subr.bf16.mxu1 %v975_v0 }
 0x124   :  { %803 = vmatpush3.bf16.msra.mxu1 %v869_v39 }
 0x125   :  { %804 = vmatprep.subr.bf16.mxu1 %v975_v0 }
 0x128   :  { %805 = vmatpush3.bf16.msra.mxu1 %v870_v53 }
 0x129   :  { %806 = vmatprep.subr.bf16.mxu1 %v975_v0 }
 0x12c   :  { %807 = vmatpush3.bf16.msra.mxu1 %v871_v54 }
 0x1cf   :  { %v272_v41 = vpop.f32.mrf.mxu1 }
 0x1d0   :  { %v273_v42 = vadd.f32 %v650_v40, %v272_v41 }
 0x1d1   :  { %v770_v43 = vpop.f32.mrf.mxu1 }
 0x1d2   :  { %v659_v44 = vmul.f32 -1.442695, %v273_v42 }
 0x1d3   :  { %v275_v45 = vpop.f32.mrf.mxu1 }
 0x1d4   :  { %880 = vpow2.f32 %v659_v44 }
 0x1d5   :  { %v771_v46 = vpop.f32.mrf.mxu1 }
 0x1e1   :  { %v881_v47 = vpop.eup %880 }
 0x1e2   :  { %v281_v48 = vadd.f32 1.0, %v881_v47 }
 0x1e4   :  { %882 = vrcp.f32 %v281_v48 }
 0x1f1   :  { %v883_v50 = vpop.eup %882 }
 0x1f2   :  { %v285_v51 = vmul.f32 %v883_v50, %v284_v49 }
 0x1f4   :  { %v286_v52 = vpack.c.bf16 %v285_v51, %v285_v51 }
 0x1f6   :  { %789 = vmatmul.mubr.bf16.vlgmr.msra.gmra.mxu0 %v286_v52 }
 0x1f7   :  { %828 = vmatprep.mubr.msk.bf16.mxu0 %vm976_vm0, %v975_v0  ;;  %813 = vmatpush3.bf16.msra.mxu0 %v872_v55 }
 0x1f8   :  { %814 = vmatprep.subr.bf16.mxu0 %v975_v0 }
 0x1fb   :  { %815 = vmatpush3.bf16.msra.mxu0 %v873_v56 }
 0x1fc   :  { %816 = vmatprep.subr.bf16.mxu0 %v975_v0 }
 0x1ff   :  { %817 = vmatpush3.bf16.msra.mxu0 %v874_v57 }
 0x200   :  { %818 = vmatprep.subr.bf16.mxu0 %v975_v0 }
 0x203   :  { %819 = vmatpush3.bf16.msra.mxu0 %v875_v58 }
 0x204   :  { %820 = vmatprep.subr.bf16.mxu0 %v975_v0 }
 0x207   :  { %821 = vmatpush3.bf16.msra.mxu0 %v876_v59 }
 0x208   :  { %822 = vmatprep.subr.bf16.mxu0 %v975_v0 }
 0x20b   :  { %823 = vmatpush3.bf16.msra.mxu0 %v877_v60 }
 0x20c   :  { %824 = vmatprep.subr.bf16.mxu0 %v975_v0 }
 0x20f   :  { %825 = vmatpush3.bf16.msra.mxu0 %v878_v6 }
 0x210   :  { %826 = vmatprep.subr.bf16.mxu0 %v975_v0 }
 0x213   :  { %827 = vmatpush3.bf16.msra.mxu0 %v879_v7 }
 0x2b6   :  { %v392_v62 = vpop.f32.mrf.mxu0 }
 0x2b7   :  { %v393_v63 = vadd.f32 %v660_v61, %v392_v62 }
 0x2b8   :  { %v790_v1 = vpop.f32.mrf.mxu0 }
 0x2b9   :  { %v398_v2 = vmax.f32 %v393_v63, 0.0 }
 0x2ba   :  { %v395_v3 = vpop.f32.mrf.mxu0 }
 0x2bb   :  { %v399_v4 = vpack.c.bf16 %v398_v2, %v398_v2 }
 0x2bc   :  { %v791_v5 = vpop.f32.mrf.mxu0 }
 0x2bd   :  { %809 = vmatmul.mubr.bf16.vlgmr.msra.gmra.mxu1 %v399_v4 }
 0x37d   :  { %v505_v9 = vpop.f32.mrf.mxu1 }
 0x37e   :  { %v506_v10 = vadd.f32 %v669_v8, %v505_v9 }
 0x37f   :  { %v810_v11 = vpop.f32.mrf.mxu1 }
 0x380   :  { %v511_v12 = vmax.f32 %v506_v10, 0.0 }
 0x381   :  { %v508_v13 = vpop.f32.mrf.mxu1 }
 0x382   :  { %v512_v14 = vpack.c.bf16 %v511_v12, %v511_v12 }
 0x383   :  { %v811_v15 = vpop.f32.mrf.mxu1 }
 0x384   :  { %829 = vmatmul.mubr.bf16.vlgmr.msra.gmra.mxu0 %v512_v14 }
 0x444   :  { %v618_v17 = vpop.f32.mrf.mxu0 }
 0x445   :  { %v619_v18 = vadd.f32 %v678_v16, %v618_v17 }
 0x446   :  { %v830_v19 = vpop.f32.mrf.mxu0 }
 0x447   :  { %624 = vst [vmem:[#allocation8] sm:$0xff] %v619_v18 }
 0x448   :  { %v621_v0 = vpop.f32.mrf.mxu0 }
 0x449   :  { %955 = shalt.err (!%p952_p5)
}
 0x44a   :  { %634 = dma.vmem_to_hbm [thread:$0]  %s632_s2, 128, %s1067_s3, [#allocation4]   ;;  %v831_v20 = vpop.f32.mrf.mxu0 }
 0x44b   :  { %968 = dma.done.wait [#allocation4], 128  }
 0x44c   :  { %969 = vsyncadd [#allocation4], 4294967168 }
 0x44d   :  { %638 = vsyncpa [#allocation3], 1 }
 0x44e   :  { %639 = vsyncpa [#allocation6], 1 }
 0x44f   :  { %640 = vsyncpa [#allocation4], 1 }

</bundles_post_ra>
